<compile_context>
chip_gen: v6e
topology: v6e:2x2x1
jax: 0.10.0
libtpu: 0.0.40
codegen_flags: <defaults>
</compile_context>

<pallas_src>
import jax
import jax.numpy as jnp
from jax.experimental import pallas as pl
from jax.experimental.pallas import tpu as pltpu

LANE = 128
VMEM_LIMIT_BYTES = 32 * 1024 * 1024          # safe on v5e / v6e / v7x
FUSED_Y_VMEM_BYTES = 8 * 1024 * 1024         # budget for the VMEM-resident y
                                             # (conservative: allows for
                                             #  double-buffered allocation)


def _round_up(x, m):
    return ((x + m - 1) // m) * m


# ----------------------------------------------------------------------------
# Shared MLP tile compute: 4 bf16 MXU matmuls with f32 accumulation.
# Returns only the live feat_dim columns (opt #1).
# ----------------------------------------------------------------------------
def _mlp_compute(x_ref, w1, b1, w2, b2, w3, b3, w4, b4, feat_dim):
    # layer1: Linear + ReLU   (Dropout(0.1) is identity at inference)
    x = x_ref[...].astype(jnp.bfloat16)
    h = jnp.dot(x, w1[...], preferred_element_type=jnp.float32)
    h = jnp.maximum(h + b1[...], 0.0)

    # layer2: Linear + ReLU
    h = jnp.dot(h.astype(jnp.bfloat16), w2[...],
                preferred_element_type=jnp.float32)
    h = jnp.maximum(h + b2[...], 0.0)

    # head[0:2]: Linear + ReLU
    h = jnp.dot(h.astype(jnp.bfloat16), w3[...],
                preferred_element_type=jnp.float32)
    h = jnp.maximum(h + b3[...], 0.0)

    # head[2]: Linear (compute lane-padded width, then slice the live columns)
    y = jnp.dot(h.astype(jnp.bfloat16), w4[...],
                preferred_element_type=jnp.float32) + b4[...]
    return y[:, :feat_dim]


# ----------------------------------------------------------------------------
# Fused single-pass kernel (small/moderate batch):
#   y is a VMEM-resident output; sumsq accumulates in scratch; the dim=0
#   normalize is applied in place on the last grid step (opt #3/#4).
# ----------------------------------------------------------------------------
def _make_fused_kernel(n_true, n_pad, tn, feat_dim):
    nb = n_pad // tn
    any_pad = n_pad != n_true

    def kernel(x_ref, w1, b1, w2, b2, w3, b3, w4, b4, y_ref, ss_ref):
        i = pl.program_id(0)

        @pl.when(i == 0)
        def _init():
            ss_ref[...] = jnp.zeros_like(ss_ref)

        y = _mlp_compute(x_ref, w1, b1, w2, b2, w3, b3, w4, b4, feat_dim)
        row0 = pl.multiple_of(i * tn, tn)

        def commit(yv):
            y_ref[pl.ds(row0, tn), :] = yv
            ssq = jnp.sum(yv * yv, axis=0, keepdims=True)
            ss_ref[0:1, :] = ss_ref[0:1, :] + ssq

        if any_pad:
            # Only tiles reaching past the true batch need the row mask
            # (padded rows must not pollute the per-column sum-of-squares).
            is_masked = (i + 1) * tn > n_true

            @pl.when(is_masked)
            def _masked():
                rows = i * tn + jax.lax.broadcasted_iota(
                    jnp.int32, (tn, 1), 0)
                commit(jnp.where(rows < n_true, y, 0.0))

            @pl.when(jnp.logical_not(is_masked))
            def _plain():
                commit(y)
        else:
            commit(y)

        @pl.when(i == nb - 1)
        def _finalize():
            # 1/max(sqrt(ss),1e-12) == rsqrt(max(ss,1e-24))  (F.normalize eps)
            inv = jax.lax.rsqrt(jnp.maximum(ss_ref[0:1, :], 1e-24))

            @pl.loop(0, nb)
            def _scale(t):
                off = pl.multiple_of(t * tn, tn)
                y_ref[pl.ds(off, tn), :] = y_ref[pl.ds(off, tn), :] * inv

    return kernel


# ----------------------------------------------------------------------------
# Two-pass path, pass 1 (large batch): batch-tiled MLP on a 2-D
# (core, tile) grid with per-core sum-of-squares partials (megacore, opt #3).
# ----------------------------------------------------------------------------
def _make_mlp_kernel(n_true, n_pad, tn, nbpc, feat_dim):
    any_pad = n_pad != n_true

    def kernel(x_ref, w1, b1, w2, b2, w3, b3, w4, b4, y_ref, ss_ref):
        i = pl.program_id(1)

        @pl.when(i == 0)
        def _init():
            ss_ref[...] = jnp.zeros_like(ss_ref)

        y = _mlp_compute(x_ref, w1, b1, w2, b2, w3, b3, w4, b4, feat_dim)

        def commit(yv):
            y_ref[...] = yv
            ssq = jnp.sum(yv * yv, axis=0, keepdims=True)
            ss_ref[0:1, :] = ss_ref[0:1, :] + ssq

        if any_pad:
            g = pl.program_id(0) * nbpc + i        # global tile index
            is_masked = (g + 1) * tn > n_true

            @pl.when(is_masked)
            def _masked():
                rows = g * tn + jax.lax.broadcasted_iota(
                    jnp.int32, (tn, 1), 0)
                commit(jnp.where(rows < n_true, y, 0.0))

            @pl.when(jnp.logical_not(is_masked))
            def _plain():
                commit(y)
        else:
            commit(y)

    return kernel


# ----------------------------------------------------------------------------
# Two-pass path, pass 2: scale by the precomputed 1/||column|| (fully parallel)
# ----------------------------------------------------------------------------
def _normalize_kernel(inv_ref, y_ref, o_ref):
    o_ref[...] = y_ref[...] * inv_ref[...]


# ----------------------------------------------------------------------------
# Wrapper
# ----------------------------------------------------------------------------
def clcp_forward(x, params, *, feat_dim, tile_n=2048, fuse_normalize=None):
    w1, b1, w2, b2, w3, b3, w4, b4 = params
    n, in_dim = x.shape
    h1p = w1.shape[1]
    op = w2.shape[1]
    fp = w4.shape[1]

    tn = _round_up(min(tile_n, _round_up(n, 8)), 8)
    n_pad1 = _round_up(n, tn)

    if fuse_normalize is None:
        # VMEM-resident y is lane-padded to 128 columns regardless of feat_dim.
        resident_bytes = n_pad1 * _round_up(feat_dim, LANE) * 4
        fuse_normalize = resident_bytes <= FUSED_Y_VMEM_BYTES

    def weight_specs(index_map):
        return [
            pl.BlockSpec((in_dim, h1p), index_map), pl.BlockSpec((1, h1p), index_map),
            pl.BlockSpec((h1p, op), index_map), pl.BlockSpec((1, op), index_map),
            pl.BlockSpec((op, op), index_map), pl.BlockSpec((1, op), index_map),
            pl.BlockSpec((op, fp), index_map), pl.BlockSpec((1, fp), index_map),
        ]

    if fuse_normalize:
        # --------------- fused single-pass path ---------------
        n_pad = n_pad1
        nb = n_pad // tn
        if n_pad != n:
            x = jnp.pad(x, ((0, n_pad - n), (0, 0)))

        out = pl.pallas_call(
            _make_fused_kernel(n, n_pad, tn, feat_dim),
            grid=(nb,),
            in_specs=[pl.BlockSpec((tn, in_dim), lambda i: (i, 0))]
            + weight_specs(lambda i: (0, 0)),
            out_specs=pl.BlockSpec((n_pad, feat_dim), lambda i: (0, 0)),
            out_shape=jax.ShapeDtypeStruct((n_pad, feat_dim), jnp.float32),
            scratch_shapes=[pltpu.VMEM((8, feat_dim), jnp.float32)],
            compiler_params=pltpu.CompilerParams(
                dimension_semantics=("arbitrary",),   # resident y + ss carry
                vmem_limit_bytes=VMEM_LIMIT_BYTES),
        )(x, w1, b1, w2, b2, w3, b3, w4, b4)
        return out[:n]

    # --------------- two-pass path (large batches) ---------------
    n_cores = 2 if n_pad1 // tn >= 2 else 1          # megacore split on v7x
    n_pad = _round_up(n, tn * n_cores)
    nb = n_pad // tn
    nbpc = nb // n_cores
    if n_pad != n:
        x = jnp.pad(x, ((0, n_pad - n), (0, 0)))

    y_unnorm, ss = pl.pallas_call(
        _make_mlp_kernel(n, n_pad, tn, nbpc, feat_dim),
        grid=(n_cores, nbpc),
        in_specs=[pl.BlockSpec((tn, in_dim), lambda c, i: (c * nbpc + i, 0))]
        + weight_specs(lambda c, i: (0, 0)),
        out_specs=(
            pl.BlockSpec((tn, feat_dim), lambda c, i: (c * nbpc + i, 0)),
            pl.BlockSpec((8, feat_dim), lambda c, i: (c, 0)),   # per-core ss
        ),
        out_shape=(
            jax.ShapeDtypeStruct((n_pad, feat_dim), jnp.float32),
            jax.ShapeDtypeStruct((n_cores * 8, feat_dim), jnp.float32),
        ),
        compiler_params=pltpu.CompilerParams(
            dimension_semantics=("parallel", "arbitrary"),
            vmem_limit_bytes=VMEM_LIMIT_BYTES),
    )(x, w1, b1, w2, b2, w3, b3, w4, b4)

    # Tiny cross-core partial reduction + rsqrt (runs as a trivial XLA op).
    inv = jax.lax.rsqrt(jnp.maximum(
        jnp.sum(ss, axis=0, keepdims=True), 1e-24))   # (1, feat_dim)

    out = pl.pallas_call(
        _normalize_kernel,
        grid=(nb,),
        in_specs=[pl.BlockSpec((1, feat_dim), lambda i: (0, 0)),
                  pl.BlockSpec((tn, feat_dim), lambda i: (i, 0))],
        out_specs=pl.BlockSpec((tn, feat_dim), lambda i: (i, 0)),
        out_shape=jax.ShapeDtypeStruct((n_pad, feat_dim), jnp.float32),
        compiler_params=pltpu.CompilerParams(
            dimension_semantics=("parallel",),
            vmem_limit_bytes=VMEM_LIMIT_BYTES),
    )(inv, y_unnorm)
    return out[:n]


# ----------------------------------------------------------------------------
# Params: torch.nn.Linear-style init, pre-transposed, zero-padded to lane-dense
# widths (multiples of 128), weights pre-cast to bf16, biases kept f32.
# ----------------------------------------------------------------------------
def init_params(key, in_dim, hidden1, out_dim, feat_dim):
    def linear(k, fi, fo, fi_pad, fo_pad):
        kw, kb = jax.random.split(k)
        bound = 1.0 / jnp.sqrt(fi)
        w = jax.random.uniform(kw, (fi, fo), jnp.float32, -bound, bound)
        b = jax.random.uniform(kb, (1, fo), jnp.float32, -bound, bound)
        w = jnp.pad(w, ((0, fi_pad - fi), (0, fo_pad - fo)))
        b = jnp.pad(b, ((0, 0), (0, fo_pad - fo)))
        return w.astype(jnp.bfloat16), b

    h1p = _round_up(hidden1, LANE)
    op = _round_up(out_dim, LANE)
    fp = _round_up(feat_dim, LANE)

    k1, k2, k3, k4 = jax.random.split(key, 4)
    w1, b1 = linear(k1, in_dim, hidden1, in_dim, h1p)   # layer1
    w2, b2 = linear(k2, hidden1, out_dim, h1p, op)      # layer2
    w3, b3 = linear(k3, out_dim, out_dim, op, op)       # head[0]
    w4, b4 = linear(k4, out_dim, feat_dim, op, fp)      # head[2]
    return (w1, b1, w2, b2, w3, b3, w4, b4)


def reference_forward(x, params, feat_dim):
    """Pure-JAX reference mirroring the kernel's bf16-matmul numerics."""
    w1, b1, w2, b2, w3, b3, w4, b4 = params

    def mm(a, w):
        return jnp.dot(a.astype(jnp.bfloat16).astype(jnp.float32),
                       w.astype(jnp.float32))

    h = jnp.maximum(mm(x, w1) + b1, 0.0)
    h = jnp.maximum(mm(h, w2) + b2, 0.0)
    h = jnp.maximum(mm(h, w3) + b3, 0.0)
    y = (mm(h, w4) + b4)[:, :feat_dim]
    norm = jnp.sqrt(jnp.sum(y * y, axis=0, keepdims=True))
    return y / jnp.maximum(norm, 1e-12)


if __name__ == "__main__":
    in_dim = 32      # opt.model_in_dim
    hidden1 = 64     # opt.model_n_hidden_1
    out_dim = 32     # opt.model_out_dim
    feat_dim = 16    # opt.feat_dim

    key = jax.random.PRNGKey(0)
    kx1, kx2, kx3, kp = jax.random.split(key, 4)
    params = init_params(kp, in_dim, hidden1, out_dim, feat_dim)

    # Case 1: fused single-pass path, multi-tile batch with masked padded rows.
    x1 = jax.random.normal(kx1, (70, in_dim), jnp.float32)
    out1 = jax.block_until_ready(clcp_forward(x1, params, feat_dim=feat_dim,
                                              tile_n=32))
    ref1 = reference_forward(x1, params, feat_dim)
    assert out1.shape == (70, feat_dim)
    assert jnp.allclose(out1, ref1, atol=2e-3, rtol=2e-3), (
        f"mismatch case1: {jnp.max(jnp.abs(out1 - ref1))}")

    # Case 2: fused path, tiny single-tile batch, default tile size.
    x2 = jax.random.normal(kx2, (8, in_dim), jnp.float32)
    out2 = jax.block_until_ready(clcp_forward(x2, params, feat_dim=feat_dim))
    ref2 = reference_forward(x2, params, feat_dim)
    assert out2.shape == (8, feat_dim)
    assert jnp.allclose(out2, ref2, atol=2e-3, rtol=2e-3), (
        f"mismatch case2: {jnp.max(jnp.abs(out2 - ref2))}")

    # Case 3: two-pass (megacore-capable) path with per-core sumsq partials
    # and a masked final tile.
    x3 = jax.random.normal(kx3, (1000, in_dim), jnp.float32)
    out3 = jax.block_until_ready(clcp_forward(x3, params, feat_dim=feat_dim,
                                              tile_n=128, fuse_normalize=False))
    ref3 = reference_forward(x3, params, feat_dim)
    assert out3.shape == (1000, feat_dim)
    assert jnp.allclose(out3, ref3, atol=2e-3, rtol=2e-3), (
        f"mismatch case3: {jnp.max(jnp.abs(out3 - ref3))}")

    print("KERNEL_OK")
</pallas_src>

<mosaic_0001>
module attributes {stable_mosaic.version = 11 : i64} {
  func.func @kernel(%arg0: i32, %arg1: memref<32x32xf32, #tpu.memory_space<vmem>>, %arg2: memref<32x128xbf16, #tpu.memory_space<vmem>>, %arg3: memref<1x128xf32, #tpu.memory_space<vmem>>, %arg4: memref<128x128xbf16, #tpu.memory_space<vmem>>, %arg5: memref<1x128xf32, #tpu.memory_space<vmem>>, %arg6: memref<128x128xbf16, #tpu.memory_space<vmem>>, %arg7: memref<1x128xf32, #tpu.memory_space<vmem>>, %arg8: memref<128x128xbf16, #tpu.memory_space<vmem>>, %arg9: memref<1x128xf32, #tpu.memory_space<vmem>>, %arg10: memref<96x16xf32, #tpu.memory_space<vmem>>, %arg11: memref<8x16xf32, #tpu.memory_space<vmem>>) attributes {dimension_semantics = [#tpu.dimension_semantics<arbitrary>], iteration_bounds = array<i64: 3>, scalar_prefetch = 0 : i64, scratch_operands = 1 : i64, tpu.core_type = #tpu.core_type<tc>, window_params = [{transform_indices = @transform_0, window_bounds = array<i64: 32, 32>}, {pipeline_mode = #tpu.pipeline_mode<synchronous>, transform_indices = @transform_1, window_bounds = array<i64: 32, 128>}, {pipeline_mode = #tpu.pipeline_mode<synchronous>, transform_indices = @transform_2, window_bounds = array<i64: 1, 128>}, {pipeline_mode = #tpu.pipeline_mode<synchronous>, transform_indices = @transform_3, window_bounds = array<i64: 128, 128>}, {pipeline_mode = #tpu.pipeline_mode<synchronous>, transform_indices = @transform_4, window_bounds = array<i64: 1, 128>}, {pipeline_mode = #tpu.pipeline_mode<synchronous>, transform_indices = @transform_5, window_bounds = array<i64: 128, 128>}, {pipeline_mode = #tpu.pipeline_mode<synchronous>, transform_indices = @transform_6, window_bounds = array<i64: 1, 128>}, {pipeline_mode = #tpu.pipeline_mode<synchronous>, transform_indices = @transform_7, window_bounds = array<i64: 128, 128>}, {pipeline_mode = #tpu.pipeline_mode<synchronous>, transform_indices = @transform_8, window_bounds = array<i64: 1, 128>}, {pipeline_mode = #tpu.pipeline_mode<synchronous>, transform_indices = @transform_9, window_bounds = array<i64: 96, 16>}]} {
    %c0_i32 = arith.constant 0 : i32
    %0 = arith.cmpi eq, %arg0, %c0_i32 : i32
    %1 = arith.extui %0 : i1 to i32
    %c0_i32_0 = arith.constant 0 : i32
    %2 = arith.cmpi ne, %1, %c0_i32_0 : i32
    scf.if %2 {
      %cst_28 = arith.constant 0.000000e+00 : f32
      %48 = vector.broadcast %cst_28 : f32 to vector<8x16xf32>
      %c0_29 = arith.constant 0 : index
      %c0_30 = arith.constant 0 : index
      %49 = vector.load %arg11[%c0_29, %c0_30] : memref<8x16xf32, #tpu.memory_space<vmem>>, vector<8x16xf32>
      tpu.vector_store %arg11[%c0_29, %c0_30], %48 {strides = array<i32>} : memref<8x16xf32, #tpu.memory_space<vmem>>, vector<8x16xf32>,
    } else {
    }
    %c0 = arith.constant 0 : index
    %c0_1 = arith.constant 0 : index
    %3 = vector.load %arg1[%c0, %c0_1] : memref<32x32xf32, #tpu.memory_space<vmem>>, vector<32x32xf32>
    %4 = arith.truncf %3 : vector<32x32xf32> to vector<32x32xbf16>
    %c0_2 = arith.constant 0 : index
    %c0_3 = arith.constant 0 : index
    %5 = vector.load %arg2[%c0_2, %c0_3] : memref<32x128xbf16, #tpu.memory_space<vmem>>, vector<32x128xbf16>
    %cst = arith.constant dense<0.000000e+00> : vector<32x128xf32>
    %6 = tpu.matmul %4, %5, %cst {dimension_numbers = #tpu.dot_dimension_numbers<[1], [0], [0], [1], [0, 0, 1, 1], [], []>} : vector<32x32xbf16>, vector<32x128xbf16>, vector<32x128xf32> -> vector<32x128xf32>
    %c0_4 = arith.constant 0 : index
    %c0_5 = arith.constant 0 : index
    %7 = vector.load %arg3[%c0_4, %c0_5] : memref<1x128xf32, #tpu.memory_space<vmem>>, vector<1x128xf32>
    %8 = vector.broadcast %7 : vector<1x128xf32> to vector<32x128xf32>
    %9 = arith.addf %6, %8 : vector<32x128xf32>
    %cst_6 = arith.constant 0.000000e+00 : f32
    %10 = vector.broadcast %cst_6 : f32 to vector<32x128xf32>
    %11 = arith.maximumf %9, %10 : vector<32x128xf32>
    %12 = arith.truncf %11 : vector<32x128xf32> to vector<32x128xbf16>
    %c0_7 = arith.constant 0 : index
    %c0_8 = arith.constant 0 : index
    %13 = vector.load %arg4[%c0_7, %c0_8] : memref<128x128xbf16, #tpu.memory_space<vmem>>, vector<128x128xbf16>
    %cst_9 = arith.constant dense<0.000000e+00> : vector<32x128xf32>
    %14 = tpu.matmul %12, %13, %cst_9 {dimension_numbers = #tpu.dot_dimension_numbers<[1], [0], [0], [1], [0, 0, 1, 1], [], []>} : vector<32x128xbf16>, vector<128x128xbf16>, vector<32x128xf32> -> vector<32x128xf32>
    %c0_10 = arith.constant 0 : index
    %c0_11 = arith.constant 0 : index
    %15 = vector.load %arg5[%c0_10, %c0_11] : memref<1x128xf32, #tpu.memory_space<vmem>>, vector<1x128xf32>
    %16 = vector.broadcast %15 : vector<1x128xf32> to vector<32x128xf32>
    %17 = arith.addf %14, %16 : vector<32x128xf32>
    %cst_12 = arith.constant 0.000000e+00 : f32
    %18 = vector.broadcast %cst_12 : f32 to vector<32x128xf32>
    %19 = arith.maximumf %17, %18 : vector<32x128xf32>
    %20 = arith.truncf %19 : vector<32x128xf32> to vector<32x128xbf16>
    %c0_13 = arith.constant 0 : index
    %c0_14 = arith.constant 0 : index
    %21 = vector.load %arg6[%c0_13, %c0_14] : memref<128x128xbf16, #tpu.memory_space<vmem>>, vector<128x128xbf16>
    %cst_15 = arith.constant dense<0.000000e+00> : vector<32x128xf32>
    %22 = tpu.matmul %20, %21, %cst_15 {dimension_numbers = #tpu.dot_dimension_numbers<[1], [0], [0], [1], [0, 0, 1, 1], [], []>} : vector<32x128xbf16>, vector<128x128xbf16>, vector<32x128xf32> -> vector<32x128xf32>
    %c0_16 = arith.constant 0 : index
    %c0_17 = arith.constant 0 : index
    %23 = vector.load %arg7[%c0_16, %c0_17] : memref<1x128xf32, #tpu.memory_space<vmem>>, vector<1x128xf32>
    %24 = vector.broadcast %23 : vector<1x128xf32> to vector<32x128xf32>
    %25 = arith.addf %22, %24 : vector<32x128xf32>
    %cst_18 = arith.constant 0.000000e+00 : f32
    %26 = vector.broadcast %cst_18 : f32 to vector<32x128xf32>
    %27 = arith.maximumf %25, %26 : vector<32x128xf32>
    %28 = arith.truncf %27 : vector<32x128xf32> to vector<32x128xbf16>
    %c0_19 = arith.constant 0 : index
    %c0_20 = arith.constant 0 : index
    %29 = vector.load %arg8[%c0_19, %c0_20] : memref<128x128xbf16, #tpu.memory_space<vmem>>, vector<128x128xbf16>
    %cst_21 = arith.constant dense<0.000000e+00> : vector<32x128xf32>
    %30 = tpu.matmul %28, %29, %cst_21 {dimension_numbers = #tpu.dot_dimension_numbers<[1], [0], [0], [1], [0, 0, 1, 1], [], []>} : vector<32x128xbf16>, vector<128x128xbf16>, vector<32x128xf32> -> vector<32x128xf32>
    %c0_22 = arith.constant 0 : index
    %c0_23 = arith.constant 0 : index
    %31 = vector.load %arg9[%c0_22, %c0_23] : memref<1x128xf32, #tpu.memory_space<vmem>>, vector<1x128xf32>
    %32 = vector.broadcast %31 : vector<1x128xf32> to vector<32x128xf32>
    %33 = arith.addf %30, %32 : vector<32x128xf32>
    %34 = vector.extract_strided_slice %33 {offsets = [0, 0], sizes = [32, 16], strides = [1, 1]} : vector<32x128xf32> to vector<32x16xf32>
    %c32_i32 = arith.constant 32 : i32
    %35 = arith.muli %arg0, %c32_i32 : i32
    %36 = tpu.assume_multiple %35, 32 : i32
    %c1_i32 = arith.constant 1 : i32
    %37 = arith.addi %arg0, %c1_i32 : i32
    %c32_i32_24 = arith.constant 32 : i32
    %38 = arith.muli %37, %c32_i32_24 : i32
    %c70_i32 = arith.constant 70 : i32
    %39 = arith.cmpi sgt, %38, %c70_i32 : i32
    %40 = arith.extui %39 : i1 to i32
    %c0_i32_25 = arith.constant 0 : i32
    %41 = arith.cmpi ne, %40, %c0_i32_25 : i32
    scf.if %41 {
      %c32_i32_28 = arith.constant 32 : i32
      %48 = arith.muli %arg0, %c32_i32_28 : i32
      %49 = tpu.iota {dimensions = array<i32: 0>} : vector<32x1xi32>
      %50 = vector.broadcast %48 : i32 to vector<32x1xi32>
      %51 = arith.addi %50, %49 : vector<32x1xi32>
      %c70_i32_29 = arith.constant 70 : i32
      %52 = vector.broadcast %c70_i32_29 : i32 to vector<32x1xi32>
      %53 = arith.cmpi slt, %51, %52 : vector<32x1xi32>
      %cst_30 = arith.constant 0.000000e+00 : f32
      %54 = vector.shape_cast %53 : vector<32x1xi1> to vector<32x1xi1>
      %55 = vector.broadcast %54 : vector<32x1xi1> to vector<32x16xi1>
      %56 = vector.broadcast %cst_30 : f32 to vector<32x16xf32>
      %57 = arith.select %55, %34, %56 : vector<32x16xi1>, vector<32x16xf32>
      %58 = arith.index_cast %36 : i32 to index
      %c0_31 = arith.constant 0 : index
      %59 = vector.load %arg10[%58, %c0_31] : memref<96x16xf32, #tpu.memory_space<vmem>>, vector<32x16xf32>
      tpu.vector_store %arg10[%58, %c0_31], %57 {strides = array<i32>} : memref<96x16xf32, #tpu.memory_space<vmem>>, vector<32x16xf32>,
      %60 = arith.mulf %57, %57 : vector<32x16xf32>
      %cst_32 = arith.constant dense<0.000000e+00> : vector<16xf32>
      %61 = vector.multi_reduction <add>, %60, %cst_32 [0] : vector<32x16xf32> to vector<16xf32>
      %62 = vector.shape_cast %61 : vector<16xf32> to vector<1x16xf32>
      %c0_33 = arith.constant 0 : index
      %c0_34 = arith.constant 0 : index
      %63 = vector.load %arg11[%c0_33, %c0_34] : memref<8x16xf32, #tpu.memory_space<vmem>>, vector<1x16xf32>
      %64 = arith.addf %63, %62 : vector<1x16xf32>
      %c0_35 = arith.constant 0 : index
      %c0_36 = arith.constant 0 : index
      %65 = vector.load %arg11[%c0_35, %c0_36] : memref<8x16xf32, #tpu.memory_space<vmem>>, vector<1x16xf32>
      tpu.vector_store %arg11[%c0_35, %c0_36], %64 {strides = array<i32>} : memref<8x16xf32, #tpu.memory_space<vmem>>, vector<1x16xf32>,
    } else {
    }
    %true = arith.constant true
    %42 = arith.xori %39, %true : i1
    %43 = arith.extui %42 : i1 to i32
    %c0_i32_26 = arith.constant 0 : i32
    %44 = arith.cmpi ne, %43, %c0_i32_26 : i32
    scf.if %44 {
      %48 = arith.index_cast %36 : i32 to index
      %c0_28 = arith.constant 0 : index
      %49 = vector.load %arg10[%48, %c0_28] : memref<96x16xf32, #tpu.memory_space<vmem>>, vector<32x16xf32>
      tpu.vector_store %arg10[%48, %c0_28], %34 {strides = array<i32>} : memref<96x16xf32, #tpu.memory_space<vmem>>, vector<32x16xf32>,
      %50 = arith.mulf %34, %34 : vector<32x16xf32>
      %cst_29 = arith.constant dense<0.000000e+00> : vector<16xf32>
      %51 = vector.multi_reduction <add>, %50, %cst_29 [0] : vector<32x16xf32> to vector<16xf32>
      %52 = vector.shape_cast %51 : vector<16xf32> to vector<1x16xf32>
      %c0_30 = arith.constant 0 : index
      %c0_31 = arith.constant 0 : index
      %53 = vector.load %arg11[%c0_30, %c0_31] : memref<8x16xf32, #tpu.memory_space<vmem>>, vector<1x16xf32>
      %54 = arith.addf %53, %52 : vector<1x16xf32>
      %c0_32 = arith.constant 0 : index
      %c0_33 = arith.constant 0 : index
      %55 = vector.load %arg11[%c0_32, %c0_33] : memref<8x16xf32, #tpu.memory_space<vmem>>, vector<1x16xf32>
      tpu.vector_store %arg11[%c0_32, %c0_33], %54 {strides = array<i32>} : memref<8x16xf32, #tpu.memory_space<vmem>>, vector<1x16xf32>,
    } else {
    }
    %c2_i32 = arith.constant 2 : i32
    %45 = arith.cmpi eq, %arg0, %c2_i32 : i32
    %46 = arith.extui %45 : i1 to i32
    %c0_i32_27 = arith.constant 0 : i32
    %47 = arith.cmpi ne, %46, %c0_i32_27 : i32
    scf.if %47 {
      %c0_28 = arith.constant 0 : index
      %c0_29 = arith.constant 0 : index
      %48 = vector.load %arg11[%c0_28, %c0_29] : memref<8x16xf32, #tpu.memory_space<vmem>>, vector<1x16xf32>
      %cst_30 = arith.constant 1.000000e-24 : f32
      %49 = vector.broadcast %cst_30 : f32 to vector<1x16xf32>
      %50 = arith.maximumf %48, %49 : vector<1x16xf32>
      %51 = math.rsqrt %50 : vector<1x16xf32>
      %c0_i32_31 = arith.constant 0 : i32
      %c3_i32 = arith.constant 3 : i32
      %52 = arith.addi %c0_i32_31, %c3_i32 : i32
      %c1_i32_32 = arith.constant 1 : i32
      scf.for %arg12 = %c0_i32_31 to %52 step %c1_i32_32  : i32 {
        %c1_i32_34 = arith.constant 1 : i32
        %53 = arith.muli %arg12, %c1_i32_34 : i32
        %c0_i32_35 = arith.constant 0 : i32
        %54 = arith.addi %c0_i32_35, %53 : i32
        %c32_i32_36 = arith.constant 32 : i32
        %55 = arith.muli %54, %c32_i32_36 : i32
        %56 = tpu.assume_multiple %55, 32 : i32
        %57 = arith.index_cast %56 : i32 to index
        %c0_37 = arith.constant 0 : index
        %58 = vector.load %arg10[%57, %c0_37] : memref<96x16xf32, #tpu.memory_space<vmem>>, vector<32x16xf32>
        %59 = vector.broadcast %51 : vector<1x16xf32> to vector<32x16xf32>
        %60 = arith.mulf %58, %59 : vector<32x16xf32>
        %61 = arith.index_cast %56 : i32 to index
        %c0_38 = arith.constant 0 : index
        %62 = vector.load %arg10[%61, %c0_38] : memref<96x16xf32, #tpu.memory_space<vmem>>, vector<32x16xf32>
        tpu.vector_store %arg10[%61, %c0_38], %60 {strides = array<i32>} : memref<96x16xf32, #tpu.memory_space<vmem>>, vector<32x16xf32>,
      }
      %c3_i32_33 = arith.constant 3 : i32
    } else {
    }
    return
  }
  func.func @transform_0(%arg0: i32) -> (i32, i32) {
    %c0_i32 = arith.constant 0 : i32
    %c0_i32_0 = arith.constant 0 : i32
    return %arg0, %c0_i32 : i32, i32
  }
  func.func @transform_1(%arg0: i32) -> (i32, i32) {
    %c0_i32 = arith.constant 0 : i32
    %c0_i32_0 = arith.constant 0 : i32
    %c0_i32_1 = arith.constant 0 : i32
    return %c0_i32, %c0_i32_0 : i32, i32
  }
  func.func @transform_2(%arg0: i32) -> (i32, i32) {
    %c0_i32 = arith.constant 0 : i32
    %c0_i32_0 = arith.constant 0 : i32
    %c0_i32_1 = arith.constant 0 : i32
    return %c0_i32, %c0_i32_0 : i32, i32
  }
  func.func @transform_3(%arg0: i32) -> (i32, i32) {
    %c0_i32 = arith.constant 0 : i32
    %c0_i32_0 = arith.constant 0 : i32
    %c0_i32_1 = arith.constant 0 : i32
    return %c0_i32, %c0_i32_0 : i32, i32
  }
  func.func @transform_4(%arg0: i32) -> (i32, i32) {
    %c0_i32 = arith.constant 0 : i32
    %c0_i32_0 = arith.constant 0 : i32
    %c0_i32_1 = arith.constant 0 : i32
    return %c0_i32, %c0_i32_0 : i32, i32
  }
  func.func @transform_5(%arg0: i32) -> (i32, i32) {
    %c0_i32 = arith.constant 0 : i32
    %c0_i32_0 = arith.constant 0 : i32
    %c0_i32_1 = arith.constant 0 : i32
    return %c0_i32, %c0_i32_0 : i32, i32
  }
  func.func @transform_6(%arg0: i32) -> (i32, i32) {
    %c0_i32 = arith.constant 0 : i32
    %c0_i32_0 = arith.constant 0 : i32
    %c0_i32_1 = arith.constant 0 : i32
    return %c0_i32, %c0_i32_0 : i32, i32
  }
  func.func @transform_7(%arg0: i32) -> (i32, i32) {
    %c0_i32 = arith.constant 0 : i32
    %c0_i32_0 = arith.constant 0 : i32
    %c0_i32_1 = arith.constant 0 : i32
    return %c0_i32, %c0_i32_0 : i32, i32
  }
  func.func @transform_8(%arg0: i32) -> (i32, i32) {
    %c0_i32 = arith.constant 0 : i32
    %c0_i32_0 = arith.constant 0 : i32
    %c0_i32_1 = arith.constant 0 : i32
    return %c0_i32, %c0_i32_0 : i32, i32
  }
  func.func @transform_9(%arg0: i32) -> (i32, i32) {
    %c0_i32 = arith.constant 0 : i32
    %c0_i32_0 = arith.constant 0 : i32
    %c0_i32_1 = arith.constant 0 : i32
    return %c0_i32, %c0_i32_0 : i32, i32
  }
}

</mosaic_0001>

<bundles_post_ra>
// kernel: tpu_custom_call.1
= control target key start
LH: loop header
LB: loop body
LE: loop exit
PB: predicated region body
PF: predicated region fallthrough
CT: control target
= control target key end

     0   :  { %14 = vsyncpa [#allocation4], 0  ;;  %s1514_s0 = inlined_call_operand.vmem [shape: f32[96,32], index: 0, kind: input, shape index: {}]   ;;  %s1515_s1 = inlined_call_operand.hbm [shape: bf16[32,128], index: 1, kind: input, shape index: {}]   ;;  %s1516_s2 = inlined_call_operand.vmem [shape: f32[1,128], index: 2, kind: input, shape index: {}]   ;;  %s1517_s3 = inlined_call_operand.vmem [shape: bf16[128,128], index: 3, kind: input, shape index: {}]   ;;  %s1518_s4 = inlined_call_operand.vmem [shape: f32[1,128], index: 4, kind: input, shape index: {}]   ;;  %s1519_s5 = inlined_call_operand.vmem [shape: bf16[128,128], index: 5, kind: input, shape index: {}]   ;;  %s1520_s6 = inlined_call_operand.vmem [shape: f32[1,128], index: 6, kind: input, shape index: {}]   ;;  %s1521_s7 = inlined_call_operand.hbm [shape: bf16[128,128], index: 7, kind: input, shape index: {}]   ;;  %s1522_s8 = inlined_call_operand.vmem [shape: f32[1,128], index: 8, kind: input, shape index: {}]   ;;  %s1523_s9 = inlined_call_operand.vmem [shape: f32[96,16], index: 9, kind: output, shape index: {}]  }
   0x1   :  { %15 = vsyncpa [#allocation6], 0  ;;  %s1358_s30 = smov 0  }
   0x2 LB: > { %s1364_s10 = sadd.s32 4294967295, %s1297_s30   ;;  %p1005_p0 = scmp.ge.s32.totalorder %s1297_s30, 1  ;;  %s1297_s30 = sphi %s1358_s30, %s21_s30  }
   0x3   : > { %p241_p1 = scmp.lt.s32.totalorder %s1297_s30, 4  ;;  %s1303_s11 = smov [#allocation3]  }
   0x4   : > { %s253_s12 = sshll.u32 %s1303_s11, 4  ;;  %p1174_p4 = scmp.eq.s32.totalorder %s1364_s10, 0  ;;  %s254_s12 = int_to_ptr.vmem [resolvable:$true] %s253_s12 }
   0x5   : > { %p1369_p3 = pnand %p1005_p0, %p241_p1  ;;  %s1304_s14 = smov [#allocation5]  }
   0x6   : > { %s281_s15 = sshll.u32 %s1304_s14, 4  ;;  %s1238_s17 = scalar_lea.vmem %s254_s12, 256  ;;  %s282_s15 = int_to_ptr.vmem [resolvable:$true] %s281_s15 }
   0x7   : > { %p1167_p5 = pneg %p1369_p3  ;;  %p1239_p8 = scmp.ne.s32.totalorder %s254_s12, %s1238_s17 }
   0x8   : > { %p1246_p11 = scmp.lt.s32.totalorder %s254_s12, %s254_s12  ;;  %p1247_p12 = scmp.lt.s32.totalorder %s1238_s17, %s1238_s17 }
   0x9   : > { %p1378_p6 = pnand %p1174_p4, %p1167_p5 }
   0xa   : > { %p1248_p13 = por %p1247_p12, %p1246_p11 }
   0xb   : > { %p1229_p7 = pneg %p1378_p6 }
   0xd   : > { %p1241_p9 = pnand %p1239_p8, %p1229_p7 }
   0xf   : > { %p1242_p10 = pneg %p1241_p9 }
  0x11   : > { %p1249_p0 = pnand %p1248_p13, %p1242_p10 }
  0x13   : > { %1252 = shalt.err (!%p1249_p0)
}
  0x14   : > { %s1305_s18 = smov 64   ;;  %s1306_s19 = smov 4  }
  0x15   : > { %1170 = dma.hbm_to_vmem [thread:$0]  (!%p1378_p6), %s1515_s1, 256, %s254_s12, [#allocation4], %s1305_s18, %s1305_s18, %s1306_s19  }
  0x16   : > { %s1264_s22 = scalar_lea.vmem %s282_s15, 1024  ;;  %p1272_p9 = scmp.lt.s32.totalorder %s282_s15, %s282_s15 }
  0x17   : > { %p1265_p1 = scmp.ne.s32.totalorder %s282_s15, %s1264_s22  ;;  %p1273_p2 = scmp.lt.s32.totalorder %s1264_s22, %s1264_s22 }
  0x19   : > { %p1267_p5 = pnand %p1265_p1, %p1229_p7  ;;  %p1274_p11 = por %p1273_p2, %p1272_p9 }
  0x1b   : > { %p1268_p8 = pneg %p1267_p5 }
  0x1d   : > { %p1275_p10 = pnand %p1274_p11, %p1268_p8 }
  0x1f   : > { %1278 = shalt.err (!%p1275_p10)
}
  0x20   : > { %1173 = dma.hbm_to_vmem [thread:$0]  (!%p1378_p6), %s1521_s7, 1024, %s282_s15, [#allocation6], %s1305_s18, %s1305_s18, %s1306_s19  }
  0x21   : > { %309 = sbr.rel (%p1369_p3) target bundleno = 978 (0x3d2), region = 56 }
  0x26   : > { %1288 = dma.done.wait (%p1174_p4), [#allocation4], 256  }
  0x27   : > { %1290 = vsyncadd (%p1174_p4), [#allocation4], 4294967040 }
  0x28   : > { %1292 = dma.done.wait (%p1174_p4), [#allocation6], 1024  }
  0x29   : > { %1294 = vsyncadd (%p1174_p4), [#allocation6], 4294966272  ;;  %s1012_s25 = sshll.u32 %s1364_s10, 2  ;;  %p1526_p3 = scmp.ne.s32.totalorder %s1364_s10, 0 }
  0x2a   : > { %p345_p2 = scmp.lt.s32.totalorder %s1012_s25, 11 }
  0x2b   : > { %354 = sbr.rel (%p1526_p3) target bundleno = 50 (0x32), region = 68 }
  0x2c   : > { %s1528_s25 = smov (!%p345_p2, %s1012_s25), 11 }
  0x2d   : > { %s1013_s26 = sshll.u32 %s1528_s25, 3 }
  0x2e   : > { %s348_s29 = scalar_lea.vmem %s1514_s0, %s1013_s26 }
  0x30   : > { %vm355_vm0 = vcmask 130048   ;;  %v1307_v0 = vmov 0.0  }
  0x31   : > { %356 = vst.msk [vmem:[#allocation2] sm:$0xff] %vm355_vm0, %v1307_v0 }
  0x32 PF: > { %v1199_v1 = vld [vmem:[#allocation3 + $0x8] sm:$0xff]   ;;  %v1200_v2 = vld [vmem:[#allocation3] sm:$0xff]   ;;  %v357_v3 = vld [vmem:[%s348_s29] sm:$0xff]  ;;  %vm386_vm1 = vcmask 261120   ;;  %s1474_s11 = sshll.u32 %s1364_s10, 5 }
  0x33   : > { %1091 = vmatprep.subr.bf16.mxu0 %v1199_v1  ;;  %v358_v4 = vld [vmem:[%s348_s29 + $0x8] sm:$0xff]  ;;  %v359_v5 = vld [vmem:[%s348_s29 + $0x10] sm:$0xff]  ;;  %v360_v7 = vld [vmem:[%s348_s29 + $0x18] sm:$0xff]  ;;  %s1056_s12 = sadd.s32 32, %s1474_s11 }
  0x34   : > { %1092 = vmatpush3.bf16.msra.mxu0 %v1199_v1  ;;  %v361_v6 = vpack.c.bf16 %v358_v4, %v357_v3  ;;  %v1201_v8 = vld [vmem:[%s1517_s3 + $0x38] sm:$0xff]   ;;  %v1202_v9 = vld [vmem:[%s1517_s3 + $0x30] sm:$0xff]   ;;  %v362_v10 = vpack.c.bf16 %v360_v7, %v359_v5  ;;  %v1203_v11 = vld [vmem:[%s1517_s3 + $0x28] sm:$0xff]   ;;  %p1049_p4 = scmp.le.s32.totalorder %s1056_s12, 70 }
  0x35   : > { %1093 = vmatprep.subr.bf16.mxu0 %v1200_v2  ;;  %1099 = vmatprep.subr.bf16.mxu1 %v1201_v8  ;;  %v1204_v12 = vld [vmem:[%s1517_s3 + $0x20] sm:$0xff]   ;;  %v1205_v13 = vld [vmem:[%s1517_s3 + $0x18] sm:$0xff]   ;;  %v1206_v14 = vld [vmem:[%s1517_s3 + $0x10] sm:$0xff]   ;;  %s853_s17 = scalar_lea.vmem (!%p1049_p4), %s1523_s9, %s1474_s11 }
  0x36   : > { %1095 = vmatprep.mubr.msk.bf16.mxu0 %vm386_vm1, %v361_v6  ;;  %1100 = vmatpush3.bf16.msra.mxu1 %v1201_v8  ;;  %v1207_v15 = vld [vmem:[%s1517_s3 + $0x8] sm:$0xff]   ;;  %v1208_v16 = vld [vmem:[%s1517_s3] sm:$0xff]   ;;  %v1209_v17 = vld [vmem:[%s1519_s5 + $0x38] sm:$0xff]  }
  0x37   : > { %1101 = vmatprep.subr.bf16.mxu1 %v1202_v9  ;;  %v1210_v18 = vld [vmem:[%s1519_s5 + $0x30] sm:$0xff]   ;;  %v1211_v19 = vld [vmem:[%s1519_s5 + $0x28] sm:$0xff]   ;;  %v1212_v20 = vld [vmem:[%s1519_s5 + $0x20] sm:$0xff]  }
  0x38   : > { %1094 = vmatpush3.bf16.msra.mxu0 %v1200_v2  ;;  %v1213_v21 = vld [vmem:[%s1519_s5 + $0x18] sm:$0xff]   ;;  %v1015_v24 = vld [vmem:[%s1516_s2] ss:$0 sm:$0xff]  ;;  %v1214_v37 = vld [vmem:[%s1519_s5 + $0x10] sm:$0xff]  }
  0x39   : > { %1119 = vmatprep.subr.bf16.mxu0 %v1209_v17  ;;  %v1215_v38 = vld [vmem:[%s1519_s5 + $0x8] sm:$0xff]   ;;  %v1216_v39 = vld [vmem:[%s1519_s5] sm:$0xff]   ;;  %v1217_v40 = vld [vmem:[#allocation5 + $0x38] sm:$0xff]  }
  0x3a   : > { %1102 = vmatpush3.bf16.msra.mxu1 %v1202_v9  ;;  %v1218_v41 = vld [vmem:[#allocation5 + $0x30] sm:$0xff]   ;;  %v1219_v42 = vld [vmem:[#allocation5 + $0x28] sm:$0xff]   ;;  %v1220_v43 = vld [vmem:[#allocation5 + $0x20] sm:$0xff]  }
  0x3b   : > { %1096 = vmatmul.mubr.msk.bf16.vlgmr.msra.gmra.mxu0 %vm386_vm1, %v362_v10  ;;  %1103 = vmatprep.subr.bf16.mxu1 %v1203_v11  ;;  %v1221_v44 = vld [vmem:[#allocation5 + $0x18] sm:$0xff]   ;;  %v1020_v47 = vld [vmem:[%s1518_s4] ss:$0 sm:$0xff]  ;;  %v1222_v60 = vld [vmem:[#allocation5 + $0x10] sm:$0xff]  }
  0x3c   : > { %1120 = vmatpush3.bf16.msra.mxu0 %v1209_v17  ;;  %v1223_v61 = vld [vmem:[#allocation5 + $0x8] sm:$0xff]   ;;  %v1224_v62 = vld [vmem:[#allocation5] sm:$0xff]  }
  0x3d   : > { %1121 = vmatprep.subr.bf16.mxu0 %v1210_v18  ;;  %v1029_v1 = vld [vmem:[%s1520_s6] ss:$0 sm:$0xff] }
  0x3e   : > { %1104 = vmatpush3.bf16.msra.mxu1 %v1203_v11 }
  0x3f   : > { %1105 = vmatprep.subr.bf16.mxu1 %v1204_v12 }
  0x40   : > { %1122 = vmatpush3.bf16.msra.mxu0 %v1210_v18 }
  0x41   : > { %1123 = vmatprep.subr.bf16.mxu0 %v1211_v19 }
  0x42   : > { %1106 = vmatpush3.bf16.msra.mxu1 %v1204_v12 }
  0x43   : > { %1107 = vmatprep.subr.bf16.mxu1 %v1205_v13 }
  0x44   : > { %1124 = vmatpush3.bf16.msra.mxu0 %v1211_v19 }
  0x45   : > { %1125 = vmatprep.subr.bf16.mxu0 %v1212_v20 }
  0x46   : > { %1108 = vmatpush3.bf16.msra.mxu1 %v1205_v13 }
  0x47   : > { %1109 = vmatprep.subr.bf16.mxu1 %v1206_v14 }
  0x48   : > { %1126 = vmatpush3.bf16.msra.mxu0 %v1212_v20 }
  0x49   : > { %1127 = vmatprep.subr.bf16.mxu0 %v1213_v21 }
  0x4a   : > { %1110 = vmatpush3.bf16.msra.mxu1 %v1206_v14  ;;  %v1038_v14 = vld [vmem:[%s1522_s8] ss:$0 sm:$0xff] }
  0x4b   : > { %1111 = vmatprep.subr.bf16.mxu1 %v1207_v15 }
  0x4c   : > { %1128 = vmatpush3.bf16.msra.mxu0 %v1213_v21 }
  0x4d   : > { %1129 = vmatprep.subr.bf16.mxu0 %v1214_v37 }
  0x4e   : > { %1112 = vmatpush3.bf16.msra.mxu1 %v1207_v15 }
  0x4f   : > { %1113 = vmatprep.subr.bf16.mxu1 %v1208_v16 }
  0x50   : > { %1130 = vmatpush3.bf16.msra.mxu0 %v1214_v37 }
  0x51   : > { %1131 = vmatprep.subr.bf16.mxu0 %v1215_v38 }
  0x52   : > { %1114 = vmatpush3.bf16.msra.mxu1 %v1208_v16 }
  0x53   : > { %1139 = vmatprep.subr.bf16.mxu1 %v1217_v40 }
  0x54   : > { %1132 = vmatpush3.bf16.msra.mxu0 %v1215_v38 }
  0x55   : > { %1133 = vmatprep.subr.bf16.mxu0 %v1216_v39 }
  0x58   : > { %1134 = vmatpush3.bf16.msra.mxu0 %v1216_v39 }
  0xfb   : > { %v1097_v22 = vpop.f32.mrf.mxu0 }
  0xfc   : > { %v436_v28 = vadd.f32 %v1097_v22, %v1015_v24 }
  0xfd   : > { %v427_v23 = vpop.f32.mrf.mxu0 }
  0xfe   : > { %v428_v26 = vadd.f32 %v1015_v24, %v427_v23  ;;  %v444_v34 = vmax.f32 %v436_v28, 0.0 }
  0xff   : > { %v1098_v25 = vpop.f32.mrf.mxu0 }
 0x100   : > { %v439_v27 = vadd.f32 %v1098_v25, %v1015_v24  ;;  %v442_v32 = vmax.f32 %v428_v26, 0.0 }
 0x101   : > { %v430_v29 = vpop.f32.mrf.mxu0 }
 0x102   : > { %v431_v30 = vadd.f32 %v1015_v24, %v430_v29  ;;  %v445_v31 = vmax.f32 %v439_v27, 0.0 }
 0x104   : > { %v443_v33 = vmax.f32 %v431_v30, 0.0  ;;  %v447_v36 = vpack.c.bf16 %v445_v31, %v444_v34 }
 0x106   : > { %v446_v35 = vpack.c.bf16 %v443_v33, %v442_v32 }
 0x108   : > { %1115 = vmatprep.mubr.bf16.mxu1 %v446_v35 }
 0x109   : > { %1116 = vmatmul.mubr.bf16.vlgmr.msra.gmra.mxu1 %v447_v36 }
 0x10a   : > { %1140 = vmatpush3.bf16.msra.mxu1 %v1217_v40 }
 0x10b   : > { %1141 = vmatprep.subr.bf16.mxu1 %v1218_v41 }
 0x10e   : > { %1142 = vmatpush3.bf16.msra.mxu1 %v1218_v41 }
 0x10f   : > { %1143 = vmatprep.subr.bf16.mxu1 %v1219_v42 }
 0x112   : > { %1144 = vmatpush3.bf16.msra.mxu1 %v1219_v42 }
 0x113   : > { %1145 = vmatprep.subr.bf16.mxu1 %v1220_v43 }
 0x116   : > { %1146 = vmatpush3.bf16.msra.mxu1 %v1220_v43 }
 0x117   : > { %1147 = vmatprep.subr.bf16.mxu1 %v1221_v44 }
 0x11a   : > { %1148 = vmatpush3.bf16.msra.mxu1 %v1221_v44 }
 0x11b   : > { %1149 = vmatprep.subr.bf16.mxu1 %v1222_v60 }
 0x11e   : > { %1150 = vmatpush3.bf16.msra.mxu1 %v1222_v60 }
 0x11f   : > { %1151 = vmatprep.subr.bf16.mxu1 %v1223_v61 }
 0x122   : > { %1152 = vmatpush3.bf16.msra.mxu1 %v1223_v61 }
 0x123   : > { %1153 = vmatprep.subr.bf16.mxu1 %v1224_v62 }
 0x126   : > { %1154 = vmatpush3.bf16.msra.mxu1 %v1224_v62 }
 0x1c9   : > { %v1117_v45 = vpop.f32.mrf.mxu1 }
 0x1ca   : > { %v562_v51 = vadd.f32 %v1117_v45, %v1020_v47 }
 0x1cb   : > { %v553_v46 = vpop.f32.mrf.mxu1 }
 0x1cc   : > { %v554_v49 = vadd.f32 %v1020_v47, %v553_v46  ;;  %v570_v57 = vmax.f32 %v562_v51, 0.0 }
 0x1cd   : > { %v1118_v48 = vpop.f32.mrf.mxu1 }
 0x1ce   : > { %v565_v50 = vadd.f32 %v1118_v48, %v1020_v47  ;;  %v568_v55 = vmax.f32 %v554_v49, 0.0 }
 0x1cf   : > { %v556_v52 = vpop.f32.mrf.mxu1 }
 0x1d0   : > { %v557_v53 = vadd.f32 %v1020_v47, %v556_v52  ;;  %v571_v54 = vmax.f32 %v565_v50, 0.0 }
 0x1d2   : > { %v569_v56 = vmax.f32 %v557_v53, 0.0  ;;  %v573_v59 = vpack.c.bf16 %v571_v54, %v570_v57 }
 0x1d4   : > { %v572_v58 = vpack.c.bf16 %v569_v56, %v568_v55 }
 0x1d6   : > { %1135 = vmatprep.mubr.bf16.mxu0 %v572_v58 }
 0x1d7   : > { %1136 = vmatmul.mubr.bf16.vlgmr.msra.gmra.mxu0 %v573_v59 }
 0x297   : > { %v1137_v63 = vpop.f32.mrf.mxu0 }
 0x298   : > { %v688_v5 = vadd.f32 %v1137_v63, %v1029_v1 }
 0x299   : > { %v679_v0 = vpop.f32.mrf.mxu0 }
 0x29a   : > { %v680_v3 = vadd.f32 %v1029_v1, %v679_v0  ;;  %v696_v11 = vmax.f32 %v688_v5, 0.0 }
 0x29b   : > { %v1138_v2 = vpop.f32.mrf.mxu0 }
 0x29c   : > { %v691_v4 = vadd.f32 %v1138_v2, %v1029_v1  ;;  %v694_v9 = vmax.f32 %v680_v3, 0.0 }
 0x29d   : > { %v682_v6 = vpop.f32.mrf.mxu0 }
 0x29e   : > { %v683_v7 = vadd.f32 %v1029_v1, %v682_v6  ;;  %v697_v8 = vmax.f32 %v691_v4, 0.0 }
 0x2a0   : > { %v695_v10 = vmax.f32 %v683_v7, 0.0  ;;  %v699_v13 = vpack.c.bf16 %v697_v8, %v696_v11 }
 0x2a2   : > { %v698_v12 = vpack.c.bf16 %v695_v10, %v694_v9 }
 0x2a4   : > { %1155 = vmatprep.mubr.bf16.mxu1 %v698_v12 }
 0x2a5   : > { %1156 = vmatmul.mubr.bf16.vlgmr.msra.gmra.mxu1 %v699_v13 }
 0x365   : > { %v1157_v15 = vpop.f32.mrf.mxu1 }
 0x366   : > { %v1480_v16 = vadd.f32 %v1157_v15, %v1038_v14 }
 0x367   : > { %v805_v17 = vpop.f32.mrf.mxu1 }
 0x368   : > { %v806_v18 = vadd.f32 %v1038_v14, %v805_v17  ;;  %826 = sbr.rel (%p1049_p4) target bundleno = 911 (0x38f), region = 72 }
 0x369   : > { %v1158_v19 = vpop.f32.mrf.mxu1 }
 0x36a   : > { %v817_v20 = vadd.f32 %v1158_v19, %v1038_v14 }
 0x36b   : > { %v808_v21 = vpop.f32.mrf.mxu1 }
 0x36c   : > { %v809_v22 = vadd.f32 %v1038_v14, %v808_v21 }
 0x36d   : > { %v827_v23 = vlaneseq  ;;  %v832_v24 = vstv %s1474_s11  ;;  %vm854_vm3 = vcmask 130048   ;;  %v876_v53 = vld [vmem:[#allocation2] sm:$0x1]  ;;  %vm878_vm7 = vcmask 122880  }
 0x36f   : > { %v828_v25 = vshrl.u32 %v827_v23, 7 }
 0x371   : > { %v833_v26 = vadd.s32 %v832_v24, %v828_v25  ;;  %v829_v27 = vadd.s32 8, %v828_v25  ;;  %v830_v28 = vadd.s32 16, %v828_v25  ;;  %v831_v29 = vadd.s32 24, %v828_v25 }
 0x373   : > { %vm837_vm2 = vcmp.lt.s32.totalorder %v833_v26, 70  ;;  %v834_v30 = vadd.s32 %v832_v24, %v829_v27  ;;  %v835_v31 = vadd.s32 %v832_v24, %v830_v28  ;;  %v836_v32 = vadd.s32 %v832_v24, %v831_v29 }
 0x374   : > { %v849_v33 = vsel %vm837_vm2, %v806_v18, 0.0 }
 0x375   : > { %855 = vst.msk [vmem:[%s853_s17] sm:$0xff] %vm854_vm3, %v849_v33  ;;  %v859_v34 = vmul.f32 %v849_v33, %v849_v33  ;;  %vm838_vm4 = vcmp.lt.s32.totalorder %v834_v30, 70  ;;  %vm839_vm5 = vcmp.lt.s32.totalorder %v835_v31, 70  ;;  %vm840_vm6 = vcmp.lt.s32.totalorder %v836_v32, 70 }
 0x376   : > { %v850_v35 = vsel %vm838_vm4, %v809_v22, 0.0  ;;  %v851_v36 = vsel %vm839_vm5, %v1480_v16, 0.0  ;;  %v852_v37 = vsel %vm840_vm6, %v817_v20, 0.0 }
 0x377   : > { %v863_v38 = vsel %vm854_vm3, %v859_v34, 0.0  ;;  %856 = vst.msk [vmem:[%s853_s17 + $0x8] sm:$0xff] %vm854_vm3, %v850_v35  ;;  %v860_v39 = vmul.f32 %v850_v35, %v850_v35  ;;  %857 = vst.msk [vmem:[%s853_s17 + $0x10] sm:$0xff] %vm854_vm3, %v851_v36  ;;  %v861_v40 = vmul.f32 %v851_v36, %v851_v36  ;;  %v862_v41 = vmul.f32 %v852_v37, %v852_v37 }
 0x378   : > { %858 = vst.msk [vmem:[%s853_s17 + $0x18] sm:$0xff] %vm854_vm3, %v852_v37 }
 0x379   : > { %v864_v42 = vsel %vm854_vm3, %v860_v39, 0.0  ;;  %v866_v43 = vsel %vm854_vm3, %v861_v40, 0.0  ;;  %v868_v45 = vsel %vm854_vm3, %v862_v41, 0.0 }
 0x37a   : > { %v865_v44 = vadd.f32 %v864_v42, %v863_v38 }
 0x37c   : > { %v867_v46 = vadd.f32 %v866_v43, %v865_v44 }
 0x37e   : > { %v869_v47 = vadd.f32 %v868_v45, %v867_v46 }
 0x380   : > { %v870_v48 = vrot.slane %v869_v47, 4 }
 0x382   : > { %v871_v49 = vadd.f32 %v870_v48, %v869_v47 }
 0x384   : > { %v872_v50 = vrot.slane %v871_v49, 2 }
 0x386   : > { %v873_v51 = vadd.f32 %v872_v50, %v871_v49 }
 0x388   : > { %v874_v52 = vrot.slane %v873_v51, 1 }
 0x38a   : > { %v875_v54 = vadd.f32 %v874_v52, %v873_v51 }
 0x38c   : > { %v877_v55 = vadd.f32 %v876_v53, %v875_v54 }
 0x38e   : > { %879 = vst.msk [vmem:[#allocation2] sm:$0x1] %vm878_vm7, %v877_v55 }
 0x38f PF: > { %p1050_p6 = scmp.gt.s32.totalorder %s1056_s12, 70 }
 0x390   : > { %s884_s20 = scalar_lea.vmem (!%p1050_p6), %s1523_s9, %s1474_s11 }
 0x391   : > { %883 = sbr.rel (%p1050_p6) target bundleno = 942 (0x3ae), region = 76 }
 0x396   : > { %vm885_vm8 = vcmask 130048   ;;  %v890_v56 = vmul.f32 %v806_v18, %v806_v18  ;;  %v891_v57 = vmul.f32 %v809_v22, %v809_v22  ;;  %v892_v58 = vmul.f32 %v1480_v16, %v1480_v16  ;;  %v907_v8 = vld [vmem:[#allocation2] sm:$0x1] }
 0x397   : > { %886 = vst.msk [vmem:[%s884_s20] sm:$0xff] %vm885_vm8, %v806_v18  ;;  %887 = vst.msk [vmem:[%s884_s20 + $0x8] sm:$0xff] %vm885_vm8, %v809_v22  ;;  %v893_v59 = vmul.f32 %v817_v20, %v817_v20  ;;  %vm909_vm9 = vcmask 122880  }
 0x398   : > { %888 = vst.msk [vmem:[%s884_s20 + $0x10] sm:$0xff] %vm885_vm8, %v1480_v16  ;;  %889 = vst.msk [vmem:[%s884_s20 + $0x18] sm:$0xff] %vm885_vm8, %v817_v20  ;;  %v894_v60 = vsel %vm885_vm8, %v890_v56, 0.0  ;;  %v895_v61 = vsel %vm885_vm8, %v891_v57, 0.0  ;;  %v897_v62 = vsel %vm885_vm8, %v892_v58, 0.0 }
 0x399   : > { %v896_v63 = vadd.f32 %v895_v61, %v894_v60  ;;  %v899_v0 = vsel %vm885_vm8, %v893_v59, 0.0 }
 0x39b   : > { %v898_v1 = vadd.f32 %v897_v62, %v896_v63 }
 0x39d   : > { %v900_v2 = vadd.f32 %v899_v0, %v898_v1 }
 0x39f   : > { %v901_v3 = vrot.slane %v900_v2, 4 }
 0x3a1   : > { %v902_v4 = vadd.f32 %v901_v3, %v900_v2 }
 0x3a3   : > { %v903_v5 = vrot.slane %v902_v4, 2 }
 0x3a5   : > { %v904_v6 = vadd.f32 %v903_v5, %v902_v4 }
 0x3a7   : > { %v905_v7 = vrot.slane %v904_v6, 1 }
 0x3a9   : > { %v906_v9 = vadd.f32 %v905_v7, %v904_v6 }
 0x3ab   : > { %v908_v10 = vadd.f32 %v907_v8, %v906_v9 }
 0x3ad   : > { %910 = vst.msk [vmem:[#allocation2] sm:$0x1] %vm909_vm9, %v908_v10 }
 0x3ae PF: > { %p1051_p7 = scmp.ne.s32.totalorder %s1364_s10, 2 }
 0x3af   : > { %s1299_s21 = smov (!%p1051_p7), 0  }
 0x3b0   : > { %914 = sbr.rel (%p1051_p7) target bundleno = 978 (0x3d2), region = 80 }
 0x3b5   : > { %v915_v11 = vld [vmem:[#allocation2] sm:$0x1] }
 0x3b6   : > { %v916_v12 = vmax.f32 %v915_v11, 1e-24 }
 0x3b8   : > { %1225 = vrsqrt.f32 %v916_v12 }
 0x3c5   : > { %v1226_v13 = vpop.eup %1225 }
 0x3c6 LB: >> { %v930_v14 = vlaneseq  ;;  %s1052_s22 = sshll.u32 %s1301_s21, 5  ;;  %vm938_vm10 = vcmask 130048   ;;  %s923_s21 = sadd.s32 1, %s1301_s21   ;;  %s1301_s21 = sphi %s1299_s21, %s923_s21  }
 0x3c7   : >> { %s925_s25 = scalar_lea.vmem %s1523_s9, %s1052_s22  ;;  %p920_p12 = scmp.ge.s32.totalorder %s923_s21, 3  }
 0x3c8   : >> { %v931_v15 = vshrl.u32 %v930_v14, 7  ;;  %v926_v16 = vld [vmem:[%s925_s25] sm:$0xff]  ;;  %v927_v18 = vld [vmem:[%s925_s25 + $0x8] sm:$0xff]  ;;  %v928_v19 = vld [vmem:[%s925_s25 + $0x10] sm:$0xff] }
 0x3c9   : >> { %v929_v20 = vld [vmem:[%s925_s25 + $0x18] sm:$0xff] }
 0x3ca   : >> { %v932_v17 = vsub.s32 0, %v931_v15 }
 0x3cc   : >> { %v933_v21 = vrot.slane %v1226_v13, %v932_v17 }
 0x3cd   : > { %922 = sbr.rel (!%p920_p12) target bundleno = 966 (0x3c6), region = 117 }
 0x3ce   : >> { %v934_v22 = vmul.f32 %v933_v21, %v926_v16  ;;  %v935_v23 = vmul.f32 %v933_v21, %v927_v18  ;;  %v936_v24 = vmul.f32 %v933_v21, %v928_v19  ;;  %v937_v25 = vmul.f32 %v933_v21, %v929_v20 }
 0x3d0   : >> { %939 = vst.msk [vmem:[%s925_s25] sm:$0xff] %vm938_vm10, %v934_v22  ;;  %940 = vst.msk [vmem:[%s925_s25 + $0x8] sm:$0xff] %vm938_vm10, %v935_v23 }
 0x3d1   : >> { %941 = vst.msk [vmem:[%s925_s25 + $0x10] sm:$0xff] %vm938_vm10, %v936_v24  ;;  %942 = vst.msk [vmem:[%s925_s25 + $0x18] sm:$0xff] %vm938_vm10, %v937_v25 }
 0x3d2 PF: > { %s21_s30 = sadd.s32 1, %s1297_s30  }
 0x3d3   : > { %p18_p13 = scmp.ge.s32.totalorder %s21_s30, 5  }
 0x3d5   :  { %20 = sbr.rel (!%p18_p13) target bundleno = 2 (0x2), region = 128 }
 0x3da   :  { %954 = vsyncpa [#allocation4], 1 }
 0x3db   :  { %956 = vsyncpa [#allocation4 + $0x1], 1 }
 0x3dc   :  { %957 = vsyncpa [#allocation6], 1 }

</bundles_post_ra>
